<compile_context>
chip_gen: v5e
topology: v5e:2x2
jax: 0.10.0
libtpu: 0.0.40
codegen_flags: <defaults>
</compile_context>

<pallas_src>
import math

import numpy as np
import jax
import jax.numpy as jnp
from jax.experimental import pallas as pl
from jax.experimental.pallas import tpu as pltpu

SQRT2 = math.sqrt(2.0)
NEG_SLOPE = 0.2
_BLUR_1D = np.asarray([1.0, 3.0, 3.0, 1.0], np.float64)
# outer([1,3,3,1],[1,3,3,1]) / 64 * factor**2 (factor=2) — used by both the
# Blur after conv_transpose and the ToRGB skip Upsample.
_K4 = np.outer(_BLUR_1D, _BLUR_1D) / float(_BLUR_1D.sum() ** 2) * 4.0


def _leaky(x):
    # fused_leaky_relu (bias already added by caller)
    return jnp.where(x >= 0.0, x, NEG_SLOPE * x) * SQRT2


# =====================================================================
# Mapping network: PixelNorm + n_mlp x (EqualLinear + fused leaky relu)
# =====================================================================
def _mapping_kernel(n_layers):
    def kernel(*refs):
        z_ref, out_ref = refs[0], refs[-1]
        x = z_ref[...]
        x = x * jax.lax.rsqrt(jnp.mean(x * x, axis=1, keepdims=True) + 1e-8)  # PixelNorm
        for i in range(n_layers):
            w_ref, b_ref = refs[1 + 2 * i], refs[2 + 2 * i]
            x = jnp.dot(x, w_ref[...], preferred_element_type=jnp.float32) + b_ref[...]
            x = _leaky(x)
        out_ref[...] = x.astype(out_ref.dtype)
    return kernel


def prep_mapping_weights(params, lr_mul=0.01):
    """Scale + transpose the EqualLinear weights ONCE (not per forward)."""
    prepped = []
    for lp in params["style"]:
        in_dim = lp["weight"].shape[1]
        scale = (1.0 / math.sqrt(in_dim)) * lr_mul
        prepped.append(((lp["weight"].astype(jnp.float32) * scale).T,
                        (lp["bias"].astype(jnp.float32) * lr_mul).reshape(1, -1)))
    return prepped


def mapping_network(prepped, z):
    B, latent = z.shape
    args = [z.astype(jnp.float32)]
    for w, b in prepped:
        args += [w, b]
    vmem = pl.BlockSpec(memory_space=pltpu.MemorySpace.VMEM)
    return pl.pallas_call(
        _mapping_kernel(len(prepped)),
        out_shape=jax.ShapeDtypeStruct((B, latent), jnp.float32),
        in_specs=[vmem] * len(args),
        out_specs=vmem,
    )(*args)


# =====================================================================
# Host-precomputed 0/1 scatter matrices: in-kernel layout changes become a
# single matmul (pad ring / dilation zeros are exact zeros by construction).
# =====================================================================
def _scatter(rows, cols, entries):
    m = np.zeros((rows, cols), np.float32)
    for r, c in entries:
        m[r, c] = 1.0
    return jnp.asarray(m)


def make_pad_matrix(H, W, ws_in, wp):
    """R(H,W,ws_in) -> zero-padded (H+2, wp) flat buffer (+2 trailing slack).
    Data lands at (1+h, 1+b).  Exact fit: max valid-tap read = (H+2)*wp+1."""
    assert wp >= W + 2
    out_len = (H + 2) * wp + 2
    ent = [(h * ws_in + b, (1 + h) * wp + 1 + b) for h in range(H) for b in range(W)]
    return _scatter(H * ws_in, out_len, ent), out_len


def make_upconv_matrix(H, W, ws_in):
    """R(H,W,ws_in) -> stride-2 zero-dilated + pad-3 buffer for the
    conv_transpose correlation.  Row stride 2W+5, +5 trailing slack; the extra
    pad row/col makes the conv output carry the blur's zero border for free."""
    ws = 2 * W + 5
    out_len = (2 * H + 5) * ws + 5
    ent = [(h * ws_in + b, (3 + 2 * h) * ws + 3 + 2 * b)
           for h in range(H) for b in range(W)]
    return _scatter(H * ws_in, out_len, ent), out_len, ws


def make_skipup_matrix(H, W, ws_in):
    """R(H,W,ws_in) -> upfirdn2d(up=2, pad=(2,1)) input buffer (zero dilated,
    pad 2 top/left, 1 bottom/right).  Row stride 2W+3, +3 trailing slack."""
    ws = 2 * W + 3
    out_len = (2 * H + 3) * ws + 3
    ent = [(h * ws_in + b, (2 + 2 * h) * ws + 2 + 2 * b)
           for h in range(H) for b in range(W)]
    return _scatter(H * ws_in, out_len, ent), out_len, ws


def make_compact_matrix(H, W, ws_in):
    """R(H,W,ws_in) -> dense (H*W) lane-packed layout (drops garbage cols)."""
    ent = [(h * ws_in + b, h * W + b) for h in range(H) for b in range(W)]
    return _scatter(H * ws_in, H * W, ent)


# =====================================================================
# Weight prep (rosinality ModulatedConv2d semantics)
# =====================================================================
def prep_styled_conv(p, latent_dim, flip):
    w = p["weight"].astype(jnp.float32)                    # (Cout, Cin, k, k)
    Cout, Cin, k, _ = w.shape
    w = w * (1.0 / math.sqrt(Cin * k * k))                 # EqualConv scale
    wsq = jnp.sum(w * w, axis=(2, 3))                      # for demod (flip-invariant)
    if flip:                                               # conv_transpose => flipped taps
        w = w[:, :, ::-1, ::-1]
    w_taps = jnp.transpose(w, (2, 3, 0, 1)).reshape(k * k, Cout, Cin)
    modw = (p["mod_w"].astype(jnp.float32) * (1.0 / math.sqrt(latent_dim))).T
    modb = p["mod_b"].astype(jnp.float32).reshape(1, Cin)
    bias = p["bias"].astype(jnp.float32).reshape(Cout, 1)
    return dict(w=w_taps, wsq=wsq, modw=modw, modb=modb, bias=bias)


def prep_torgb(p, latent_dim):
    w = p["weight"].astype(jnp.float32)                    # (3, Cin, 1, 1)
    Cout, Cin = w.shape[0], w.shape[1]
    w = (w * (1.0 / math.sqrt(Cin))).reshape(1, Cout, Cin)
    modw = (p["mod_w"].astype(jnp.float32) * (1.0 / math.sqrt(latent_dim))).T
    modb = p["mod_b"].astype(jnp.float32).reshape(1, Cin)
    bias = p["bias"].astype(jnp.float32).reshape(Cout, 1)
    return dict(w=w, modw=modw, modb=modb, bias=bias)


# =====================================================================
# Fully fused synthesis network: one Pallas kernel, grid over batch.
# =====================================================================
def synthesize(params, cfg, latent, noises):
    B = latent.shape[0]
    Ld = cfg["latent"]
    log_size = cfg["log_size"]
    channels = cfg["channels"]
    size = cfg["size"]

    arrays, specs, index = [], [], {}

    def add_const(name, arr):
        nd = arr.ndim
        index[name] = len(arrays)
        arrays.append(arr)
        specs.append(pl.BlockSpec(arr.shape, lambda b, _nd=nd: (0,) * _nd))

    def add_batched(name, arr):                            # arr: (B, ...)
        nd = arr.ndim
        index[name] = len(arrays)
        arrays.append(arr)
        specs.append(pl.BlockSpec((1,) + arr.shape[1:],
                                  lambda b, _nd=nd: (b,) + (0,) * (_nd - 1)))

    def add_modconv(prefix, mp):
        add_const(prefix + "_w", mp["w"])
        if "wsq" in mp:
            add_const(prefix + "_wsq", mp["wsq"])
        add_const(prefix + "_mw", mp["modw"])
        add_const(prefix + "_mb", mp["modb"])
        add_const(prefix + "_b", mp["bias"])

    def prep_noise(nz, noise_w, H, W, WS):
        # fold the NoiseInjection scalar into the (1-channel, tiny) noise plane
        n = nz.astype(jnp.float32) * noise_w
        n = jnp.pad(n, ((0, 0), (0, 0), (0, 0), (0, WS - W)))
        return n.reshape(n.shape[0], 1, H * WS)

    add_batched("latent", latent.astype(jnp.float32))
    C4 = channels[4]
    add_const("const", params["input"].astype(jnp.float32).reshape(C4, 16))

    ops = []

    # ---- conv1: StyledConv 3x3 (no upsample) at 4x4 ---------------------
    add_modconv("c0", prep_styled_conv(params["conv1"], Ld, flip=False))
    wp = 6
    S, _ = make_pad_matrix(4, 4, 4, wp)
    add_const("c0_S", S)
    add_batched("c0_n", prep_noise(noises[0], params["conv1"]["noise_w"], 4, 4, wp))
    ops.append(dict(kind="conv", pre="c0", sty=0,
                    taps=[kh * wp + kw for kh in range(3) for kw in range(3)],
                    L=4 * wp))
    feat_layout = (4, 4, wp)

    # ---- to_rgb1 ---------------------------------------------------------
    add_modconv("r0", prep_torgb(params["to_rgb1"], Ld))
    ops.append(dict(kind="torgb", pre="r0", sty=1, has_skip=False))
    skip_layout = feat_layout

    sty, ni = 1, 1
    for ridx in range(log_size - 2):
        H, W, WS = feat_layout
        # ---- upsample StyledConv: conv_transpose(stride 2) + blur --------
        pre = f"u{ridx}"
        add_modconv(pre, prep_styled_conv(params["convs"][2 * ridx], Ld, flip=True))
        S, _, ws_u = make_upconv_matrix(H, W, WS)
        add_const(pre + "_S", S)
        add_batched(pre + "_n",
                    prep_noise(noises[ni], params["convs"][2 * ridx]["noise_w"],
                               2 * H, 2 * W, ws_u))
        ops.append(dict(kind="upconv", pre=pre, sty=sty,
                        conv_taps=[kh * ws_u + kw for kh in range(3) for kw in range(3)],
                        blur_taps=[(u * ws_u + v, float(_K4[u, v]))
                                   for u in range(4) for v in range(4)],
                        L_conv=(2 * H + 3) * ws_u + 3,
                        L_blur=(2 * H) * ws_u))
        feat_layout = (2 * H, 2 * W, ws_u)
        ni += 1

        # ---- second StyledConv (no upsample) -----------------------------
        H2, W2, WS2 = feat_layout
        pre = f"s{ridx}"
        add_modconv(pre, prep_styled_conv(params["convs"][2 * ridx + 1], Ld, flip=False))
        wp2 = W2 + 3      # W2+2 padding + 1 extra col so stride matches skip path
        S, _ = make_pad_matrix(H2, W2, WS2, wp2)
        add_const(pre + "_S", S)
        add_batched(pre + "_n",
                    prep_noise(noises[ni], params["convs"][2 * ridx + 1]["noise_w"],
                               H2, W2, wp2))
        ops.append(dict(kind="conv", pre=pre, sty=sty + 1,
                        taps=[kh * wp2 + kw for kh in range(3) for kw in range(3)],
                        L=H2 * wp2))
        feat_layout = (H2, W2, wp2)
        ni += 1

        # ---- skip Upsample (upfirdn2d up=2, pad=(2,1)) --------------------
        sH, sW, sWS = skip_layout
        S, _, ws_sk = make_skipup_matrix(sH, sW, sWS)
        assert ws_sk == wp2, "skip-upsample stride must equal conv2 output stride"
        pre = f"k{ridx}"
        add_const(pre + "_S", S)
        ops.append(dict(kind="skipup", pre=pre,
                        taps=[(u * ws_sk + v, float(_K4[u, v]))
                              for u in range(4) for v in range(4)],
                        L=(2 * sH) * ws_sk))
        skip_layout = (2 * sH, 2 * sW, ws_sk)

        # ---- ToRGB (+ fused skip add) -------------------------------------
        pre = f"r{ridx + 1}"
        add_modconv(pre, prep_torgb(params["to_rgbs"][ridx], Ld))
        ops.append(dict(kind="torgb", pre=pre, sty=sty + 2, has_skip=True))
        sty += 2

    Hf, Wf, WSf = skip_layout
    assert (Hf, Wf) == (size, size)
    add_const("final_S", make_compact_matrix(Hf, Wf, WSf))

    def kernel(*refs):
        def R(name):
            return refs[index[name]]

        lat = R("latent")[0]                                 # (n_latent, latent)

        def modulate(pre, sty_i, demod):
            svec = lat[sty_i:sty_i + 1, :]                   # (1, latent)
            s = jnp.dot(svec, R(pre + "_mw")[...],
                        preferred_element_type=jnp.float32) + R(pre + "_mb")[...]
            w = R(pre + "_w")[...]                           # (taps, Cout, Cin)
            d = None
            if demod:
                d = jax.lax.rsqrt(
                    jnp.sum(R(pre + "_wsq")[...] * (s * s), axis=1, keepdims=True)
                    + 1e-8)                                  # (Cout, 1)
            return w, s, d

        def tap_conv(w, s, d, P, taps, L):
            acc = None
            for t, off in enumerate(taps):
                wt = w[t] * s                                # modulate on VPU
                if d is not None:
                    wt = wt * d                              # demod folded into weights
                c = jnp.dot(wt, P[:, off:off + L],
                            preferred_element_type=jnp.float32)
                acc = c if acc is None else acc + c
            return acc

        def fir(P, taps, L):                                 # depthwise 4x4 blur
            acc = None
            for off, kv in taps:
                c = kv * P[:, off:off + L]
                acc = c if acc is None else acc + c
            return acc

        feat = R("const")[...]                               # ConstantInput (C4, 16)
        skip = None
        for op in ops:
            pre = op["pre"]
            if op["kind"] == "conv":
                w, s, d = modulate(pre, op["sty"], True)
                P = jnp.dot(feat, R(pre + "_S")[...],
                            preferred_element_type=jnp.float32)
                acc = tap_conv(w, s, d, P, op["taps"], op["L"])
                feat = _leaky(acc + R(pre + "_n")[0] + R(pre + "_b")[...])
            elif op["kind"] == "upconv":
                w, s, d = modulate(pre, op["sty"], True)
                DB = jnp.dot(feat, R(pre + "_S")[...],        # zero-dilate + pad
                             preferred_element_type=jnp.float32)
                CB = tap_conv(w, s, d, DB, op["conv_taps"], op["L_conv"])
                acc = fir(CB, op["blur_taps"], op["L_blur"])  # [1,3,3,1] blur
                feat = _leaky(acc + R(pre + "_n")[0] + R(pre + "_b")[...])
            elif op["kind"] == "skipup":
                SDB = jnp.dot(skip, R(pre + "_S")[...],
                              preferred_element_type=jnp.float32)
                skip = fir(SDB, op["taps"], op["L"])
            else:  # torgb (1x1, no demod, no activation)
                w, s, _ = modulate(pre, op["sty"], False)
                rgb = jnp.dot(w[0] * s, feat,
                              preferred_element_type=jnp.float32) + R(pre + "_b")[...]
                skip = rgb if not op["has_skip"] else rgb + skip

        # lane-dense compaction to (3, size*size); size*size = 256 = 2 * 128
        out = jnp.dot(skip, R("final_S")[...], preferred_element_type=jnp.float32)
        refs[-1][0] = out

    out = pl.pallas_call(
        kernel,
        out_shape=jax.ShapeDtypeStruct((B, 3, size * size), jnp.float32),
        grid=(B,),
        in_specs=specs,
        out_specs=pl.BlockSpec((1, 3, size * size), lambda b: (b, 0, 0)),
        compiler_params=pltpu.CompilerParams(dimension_semantics=("parallel",)),
    )(*arrays)
    return out.reshape(B, 3, size, size)


# =====================================================================
# Generator: config, params, forward
# =====================================================================
def make_config(size=16, latent=64, n_mlp=2):
    log_size = int(math.log2(size))
    channels = {4: 32, 8: 16, 16: 8, 32: 8}
    num_layers = (log_size - 2) * 2 + 1
    n_latent = log_size * 2 - 2
    noise_res = [4] + [2 ** i for i in range(3, log_size + 1) for _ in range(2)]
    return dict(size=size, latent=latent, n_mlp=n_mlp, log_size=log_size,
                channels=channels, num_layers=num_layers, n_latent=n_latent,
                noise_res=noise_res)


def _styledconv_params(key, in_ch, out_ch, k, latent):
    k1, k2 = jax.random.split(key)
    return dict(
        weight=jax.random.normal(k1, (out_ch, in_ch, k, k), jnp.float32),
        mod_w=jax.random.normal(k2, (in_ch, latent), jnp.float32),
        mod_b=jnp.ones((in_ch,), jnp.float32),
        bias=jnp.zeros((out_ch,), jnp.float32),       # FusedLeakyReLU bias
        noise_w=jnp.zeros((), jnp.float32),           # NoiseInjection weight (init 0)
    )


def _torgb_params(key, in_ch, latent):
    k1, k2 = jax.random.split(key)
    return dict(
        weight=jax.random.normal(k1, (3, in_ch, 1, 1), jnp.float32),
        mod_w=jax.random.normal(k2, (in_ch, latent), jnp.float32),
        mod_b=jnp.ones((in_ch,), jnp.float32),
        bias=jnp.zeros((1, 3, 1, 1), jnp.float32),
    )


def init_generator_params(key, cfg):
    latent, channels, log_size = cfg["latent"], cfg["channels"], cfg["log_size"]
    keys = iter(jax.random.split(key, 64))
    params = {}
    params["style"] = [dict(weight=jax.random.normal(next(keys), (latent, latent),
                                                     jnp.float32) / 0.01,
                            bias=jnp.zeros((latent,), jnp.float32))
                       for _ in range(cfg["n_mlp"])]
    params["input"] = jax.random.normal(next(keys), (1, channels[4], 4, 4), jnp.float32)
    params["conv1"] = _styledconv_params(next(keys), channels[4], channels[4], 3, latent)
    params["to_rgb1"] = _torgb_params(next(keys), channels[4], latent)
    convs, to_rgbs = [], []
    in_ch = channels[4]
    for i in range(3, log_size + 1):
        out_ch = channels[2 ** i]
        convs.append(_styledconv_params(next(keys), in_ch, out_ch, 3, latent))  # upsample
        convs.append(_styledconv_params(next(keys), out_ch, out_ch, 3, latent))
        to_rgbs.append(_torgb_params(next(keys), out_ch, latent))
        in_ch = out_ch
    params["convs"], params["to_rgbs"] = convs, to_rgbs
    params["noises"] = [jax.random.normal(next(keys), (1, 1, r, r), jnp.float32)
                        for r in cfg["noise_res"]]
    return params


def generator_forward(params, cfg, mapping_prepped, styles, *, noise_key=None,
                      return_latents=False, truncation=1.0, truncation_latent=None,
                      input_is_latent=False, noise=None, randomize_noise=True):
    if not input_is_latent:
        styles = [mapping_network(mapping_prepped, s) for s in styles]
    B = styles[0].shape[0]
    if noise is None:
        if randomize_noise:
            keys = jax.random.split(noise_key, cfg["num_layers"])
            noise = [jax.random.normal(keys[li], (B, 1, r, r), jnp.float32)
                     for li, r in enumerate(cfg["noise_res"])]
        else:
            noise = [jnp.broadcast_to(n, (B,) + n.shape[1:]) for n in params["noises"]]
    if truncation < 1.0:
        styles = [truncation_latent + truncation * (s - truncation_latent) for s in styles]
    if len(styles) < 2:
        latent = jnp.repeat(styles[0][:, None, :], cfg["n_latent"], axis=1)
    else:
        # TODO(synk): torch uses random.randint for the style-mixing inject_index.
        inject_index = cfg["n_latent"] // 2
        l1 = jnp.repeat(styles[0][:, None, :], inject_index, axis=1)
        l2 = jnp.repeat(styles[1][:, None, :], cfg["n_latent"] - inject_index, axis=1)
        latent = jnp.concatenate([l1, l2], axis=1)
    image = synthesize(params, cfg, latent, noise)
    return (image, latent) if return_latents else (image, None)


class StyleGan2GeneratorPallas:
    """Mirror of the PyTorch StyleGan2Generator wrapper (synthetic weights)."""
    # TODO(synk): torch.load of the g_ema checkpoint has no Pallas equivalent;
    #             weights are synthesized with matching init distributions.

    def __init__(self, key, cfg, mean_latent_samples=16, mean_latent_key=None):
        self.cfg = cfg
        self.params = init_generator_params(key, cfg)
        self.mapping_prepped = prep_mapping_weights(self.params)
        mk = mean_latent_key if mean_latent_key is not None else jax.random.PRNGKey(1)
        z = jax.random.normal(mk, (mean_latent_samples, cfg["latent"]), jnp.float32)
        self.mean_latent = jnp.mean(mapping_network(self.mapping_prepped, z),
                                    axis=0, keepdims=True)

    def get_style(self, styles):
        return [mapping_network(self.mapping_prepped, s) for s in styles]

    def forward(self, styles, return_latents=False, truncation=1.0,
                input_is_latent=False, noise=None, randomize_noise=True,
                noise_key=None):
        return generator_forward(self.params, self.cfg, self.mapping_prepped, styles,
                                 noise_key=noise_key, return_latents=return_latents,
                                 truncation=truncation,
                                 truncation_latent=self.mean_latent,
                                 input_is_latent=input_is_latent, noise=noise,
                                 randomize_noise=randomize_noise)


if __name__ == "__main__":
    key = jax.random.PRNGKey(0)
    k_param, k_z, k_noise, k_mean = jax.random.split(key, 4)

    cfg = make_config(size=16, latent=64, n_mlp=2)      # small config: 16x16 output
    gen = StyleGan2GeneratorPallas(k_param, cfg, mean_latent_samples=16,
                                   mean_latent_key=k_mean)

    z = jax.random.normal(k_z, (2, cfg["latent"]), jnp.float32)   # batch=2 latent codes
    image, _ = gen.forward([z], noise_key=k_noise, truncation=1.0, randomize_noise=True)
    image = jax.block_until_ready(image)

    assert image.shape == (2, 3, cfg["size"], cfg["size"]), image.shape
    assert bool(jnp.all(jnp.isfinite(image)))
    print("KERNEL_OK")
</pallas_src>

<mosaic_0001>
module attributes {stable_mosaic.version = 11 : i64} {
  func.func @kernel(%arg0: memref<16x64xf32, #tpu.memory_space<vmem>>, %arg1: memref<64x64xf32, #tpu.memory_space<vmem>>, %arg2: memref<1x64xf32, #tpu.memory_space<vmem>>, %arg3: memref<64x64xf32, #tpu.memory_space<vmem>>, %arg4: memref<1x64xf32, #tpu.memory_space<vmem>>, %arg5: memref<16x64xf32, #tpu.memory_space<vmem>>) attributes {dimension_semantics = [], scalar_prefetch = 0 : i64, scratch_operands = 0 : i64, tpu.core_type = #tpu.core_type<tc>} {
    %c0 = arith.constant 0 : index
    %c0_0 = arith.constant 0 : index
    %0 = vector.load %arg0[%c0, %c0_0] : memref<16x64xf32, #tpu.memory_space<vmem>>, vector<16x64xf32>
    %1 = arith.mulf %0, %0 : vector<16x64xf32>
    %cst = arith.constant dense<0.000000e+00> : vector<16xf32>
    %2 = vector.multi_reduction <add>, %1, %cst [1] : vector<16x64xf32> to vector<16xf32>
    %3 = vector.shape_cast %2 : vector<16xf32> to vector<16x1xf32>
    %cst_1 = arith.constant 6.400000e+01 : f32
    %4 = vector.broadcast %cst_1 : f32 to vector<16x1xf32>
    %5 = arith.divf %3, %4 : vector<16x1xf32>
    %cst_2 = arith.constant 9.99999993E-9 : f32
    %6 = vector.broadcast %cst_2 : f32 to vector<16x1xf32>
    %7 = arith.addf %5, %6 : vector<16x1xf32>
    %8 = math.rsqrt %7 : vector<16x1xf32>
    %9 = vector.broadcast %8 : vector<16x1xf32> to vector<16x64xf32>
    %10 = arith.mulf %0, %9 : vector<16x64xf32>
    %c0_3 = arith.constant 0 : index
    %c0_4 = arith.constant 0 : index
    %11 = vector.load %arg1[%c0_3, %c0_4] : memref<64x64xf32, #tpu.memory_space<vmem>>, vector<64x64xf32>
    %cst_5 = arith.constant dense<0.000000e+00> : vector<16x64xf32>
    %12 = tpu.matmul %10, %11, %cst_5 {dimension_numbers = #tpu.dot_dimension_numbers<[1], [0], [0], [1], [0, 0, 1, 1], [], []>} : vector<16x64xf32>, vector<64x64xf32>, vector<16x64xf32> -> vector<16x64xf32>
    %c0_6 = arith.constant 0 : index
    %c0_7 = arith.constant 0 : index
    %13 = vector.load %arg2[%c0_6, %c0_7] : memref<1x64xf32, #tpu.memory_space<vmem>>, vector<1x64xf32>
    %14 = vector.broadcast %13 : vector<1x64xf32> to vector<16x64xf32>
    %15 = arith.addf %12, %14 : vector<16x64xf32>
    %cst_8 = arith.constant 0.000000e+00 : f32
    %16 = vector.broadcast %cst_8 : f32 to vector<16x64xf32>
    %17 = arith.cmpf oge, %15, %16 : vector<16x64xf32>
    %cst_9 = arith.constant 2.000000e-01 : f32
    %18 = vector.broadcast %cst_9 : f32 to vector<16x64xf32>
    %19 = arith.mulf %18, %15 : vector<16x64xf32>
    %20 = arith.select %17, %15, %19 : vector<16x64xi1>, vector<16x64xf32>
    %cst_10 = arith.constant 1.41421354 : f32
    %21 = vector.broadcast %cst_10 : f32 to vector<16x64xf32>
    %22 = arith.mulf %20, %21 : vector<16x64xf32>
    %c0_11 = arith.constant 0 : index
    %c0_12 = arith.constant 0 : index
    %23 = vector.load %arg3[%c0_11, %c0_12] : memref<64x64xf32, #tpu.memory_space<vmem>>, vector<64x64xf32>
    %cst_13 = arith.constant dense<0.000000e+00> : vector<16x64xf32>
    %24 = tpu.matmul %22, %23, %cst_13 {dimension_numbers = #tpu.dot_dimension_numbers<[1], [0], [0], [1], [0, 0, 1, 1], [], []>} : vector<16x64xf32>, vector<64x64xf32>, vector<16x64xf32> -> vector<16x64xf32>
    %c0_14 = arith.constant 0 : index
    %c0_15 = arith.constant 0 : index
    %25 = vector.load %arg4[%c0_14, %c0_15] : memref<1x64xf32, #tpu.memory_space<vmem>>, vector<1x64xf32>
    %26 = vector.broadcast %25 : vector<1x64xf32> to vector<16x64xf32>
    %27 = arith.addf %24, %26 : vector<16x64xf32>
    %cst_16 = arith.constant 0.000000e+00 : f32
    %28 = vector.broadcast %cst_16 : f32 to vector<16x64xf32>
    %29 = arith.cmpf oge, %27, %28 : vector<16x64xf32>
    %cst_17 = arith.constant 2.000000e-01 : f32
    %30 = vector.broadcast %cst_17 : f32 to vector<16x64xf32>
    %31 = arith.mulf %30, %27 : vector<16x64xf32>
    %32 = arith.select %29, %27, %31 : vector<16x64xi1>, vector<16x64xf32>
    %cst_18 = arith.constant 1.41421354 : f32
    %33 = vector.broadcast %cst_18 : f32 to vector<16x64xf32>
    %34 = arith.mulf %32, %33 : vector<16x64xf32>
    %c0_19 = arith.constant 0 : index
    %c0_20 = arith.constant 0 : index
    %35 = vector.load %arg5[%c0_19, %c0_20] : memref<16x64xf32, #tpu.memory_space<vmem>>, vector<16x64xf32>
    tpu.vector_store %arg5[%c0_19, %c0_20], %34 {strides = array<i32>} : memref<16x64xf32, #tpu.memory_space<vmem>>, vector<16x64xf32>,
    return
  }
}

</mosaic_0001>

<bundles_post_ra>
// kernel: tpu_custom_call.1
= control target key start
LH: loop header
LB: loop body
LE: loop exit
PB: predicated region body
PF: predicated region fallthrough
CT: control target
= control target key end

     0   :  { %10 = vsyncpa [#allocation3], 0  ;;  %s454_s0 = inlined_call_operand.hbm [shape: f32[16,64], index: 0, kind: input, shape index: {}]   ;;  %s455_s1 = inlined_call_operand.hbm [shape: f32[64,64], index: 1, kind: input, shape index: {}]   ;;  %s456_s2 = inlined_call_operand.vmem [shape: f32[1,64], index: 2, kind: input, shape index: {}]   ;;  %s457_s3 = inlined_call_operand.hbm [shape: f32[64,64], index: 3, kind: input, shape index: {}]   ;;  %s458_s4 = inlined_call_operand.vmem [shape: f32[1,64], index: 4, kind: input, shape index: {}]   ;;  %s459_s5 = inlined_call_operand.hbm [shape: f32[16,64], index: 5, kind: output, shape index: {}]  }
   0x1   :  { %11 = vsyncpa [#allocation6], 0 }
   0x2   :  { %12 = vsyncpa [#allocation4], 0  ;;  %s30_s20 = sshll.u32 %s455_s1, 4  ;;  %s369_s21 = smov [#allocation5]   ;;  %s31_s20 = int_to_ptr.hbm [resolvable:$true] %s30_s20 }
   0x3   :  { %s32_s22 = sshll.u32 %s369_s21, 4  ;;  %s17_s25 = sshll.u32 %s454_s0, 4  ;;  %s33_s22 = int_to_ptr.vmem [resolvable:$true] %s32_s22  ;;  %s18_s25 = int_to_ptr.hbm [resolvable:$true] %s17_s25 }
   0x4   :  { %s370_s26 = smov 128   ;;  %s371_s27 = smov 8  }
   0x5   :  { %38 = dma.hbm_to_vmem [thread:$0]  %s31_s20, 1024, %s33_s22, [#allocation6], %s370_s26, %s370_s26, %s371_s27  }
   0x6   :  { %s372_s28 = smov [#allocation2]   ;;  %s45_s1 = sshll.u32 %s457_s3, 4  ;;  %s46_s1 = int_to_ptr.hbm [resolvable:$true] %s45_s1 }
   0x7   :  { %s19_s29 = sshll.u32 %s372_s28, 4  ;;  %s373_s0 = smov [#allocation7]   ;;  %s20_s29 = int_to_ptr.vmem [resolvable:$true] %s19_s29 }
   0x8   :  { %25 = dma.hbm_to_vmem [thread:$0]  %s18_s25, 256, %s20_s29, [#allocation3], %s370_s26, %s370_s26, %s371_s27  }
   0x9   :  { %s47_s7 = sshll.u32 %s373_s0, 4  ;;  %s48_s7 = int_to_ptr.vmem [resolvable:$true] %s47_s7 }
   0xa   :  { %53 = dma.hbm_to_vmem [thread:$0]  %s46_s1, 1024, %s48_s7, [#allocation6], %s370_s26, %s370_s26, %s371_s27  }
   0xb   :  { %363 = dma.done.wait [#allocation3], 256  }
   0xc   :  { %364 = vsyncadd [#allocation3], 4294967040 }
   0xd   :  { %365 = dma.done.wait [#allocation6], 2048  }
   0xe   :  { %366 = vsyncadd [#allocation6], 4294965248  ;;  %v424_v0 = vld [vmem:[#allocation2 + $0x8] sm:$0xff]  ;;  %vm72_vm0 = vcmask 523264   ;;  %v428_v2 = vld [vmem:[#allocation2] sm:$0xff]  ;;  %v374_v6 = vmov 64.0  }
   0xf   :  { %v71_v1 = vmul.f32 %v424_v0, %v424_v0  ;;  %v70_v4 = vmul.f32 %v428_v2, %v428_v2  ;;  %261 = vrcp.f32 %v374_v6  ;;  %v119_v7 = vld [vmem:[#allocation5 + $0x38] sm:$0xff]  ;;  %v118_v9 = vld [vmem:[#allocation5 + $0x30] sm:$0xff]  ;;  %v117_v10 = vld [vmem:[#allocation5 + $0x28] sm:$0xff]  ;;  %s218_s14 = sshll.u32 %s459_s5, 4  ;;  %s219_s14 = int_to_ptr.hbm [resolvable:$true] %s218_s14 }
  0x10   :  { %236 = vmatpush.msra.mxu2 %v119_v7  ;;  %138 = vmatpush.msra.mxu0 %v119_v7  ;;  %v116_v12 = vld [vmem:[#allocation5 + $0x20] sm:$0xff]  ;;  %v115_v13 = vld [vmem:[#allocation5 + $0x18] sm:$0xff]  ;;  %v114_v15 = vld [vmem:[#allocation5 + $0x10] sm:$0xff] }
  0x11   :  { %v76_v3 = vsel %vm72_vm0, %v71_v1, 0.0  ;;  %v73_v5 = vsel %vm72_vm0, %v70_v4, 0.0  ;;  %v113_v16 = vld [vmem:[#allocation5 + $0x8] sm:$0xff]  ;;  %v112_v18 = vld [vmem:[#allocation5] sm:$0xff]  ;;  %v168_v23 = vld [vmem:[#allocation7 + $0x38] sm:$0xff] }
  0x12   :  { %77 = vadd.xlane.f32.xlu0 %v76_v3  ;;  %237 = vmatpush.msra.mxu2 %v118_v9  ;;  %v167_v24 = vld [vmem:[#allocation7 + $0x30] sm:$0xff]  ;;  %v166_v26 = vld [vmem:[#allocation7 + $0x28] sm:$0xff]  ;;  %v165_v27 = vld [vmem:[#allocation7 + $0x20] sm:$0xff] }
  0x13   :  { %139 = vmatpush.msra.mxu0 %v118_v9  ;;  %244 = vmatpush.msra.mxu3 %v168_v23  ;;  %v164_v47 = vld [vmem:[#allocation7 + $0x18] sm:$0xff]  ;;  %v163_v48 = vld [vmem:[#allocation7 + $0x10] sm:$0xff]  ;;  %v162_v49 = vld [vmem:[#allocation7 + $0x8] sm:$0xff] }
  0x14   :  { %238 = vmatpush.msra.mxu2 %v117_v10  ;;  %187 = vmatpush.msra.mxu1 %v168_v23  ;;  %v161_v50 = vld [vmem:[#allocation7] sm:$0xff]  ;;  %v259_v51 = vld [vmem:[%s456_s2] ss:$0 sm:$0xff]  ;;  %s375_s2 = smov [#allocation8]  }
  0x15   :  { %v262_v8 = vpop.eup %261  ;;  %140 = vmatpush.msra.mxu0 %v117_v10  ;;  %245 = vmatpush.msra.mxu3 %v167_v24  ;;  %v260_v62 = vld [vmem:[%s458_s4] ss:$0 sm:$0xff]  ;;  %s216_s11 = sshll.u32 %s375_s2, 4  ;;  %s217_s11 = int_to_ptr.vmem [resolvable:$true] %s216_s11 }
  0x16   :  { %v80_v11 = vmul.f32 64.0, %v262_v8  ;;  %239 = vmatpush.msra.mxu2 %v116_v12  ;;  %vm84_vm1 = vweird.f32 %v262_v8  ;;  %188 = vmatpush.msra.mxu1 %v167_v24 }
  0x17   :  { %141 = vmatpush.msra.mxu0 %v116_v12  ;;  %246 = vmatpush.msra.mxu3 %v166_v26 }
  0x18   :  { %v81_v14 = vsub.f32 1.0, %v80_v11  ;;  %240 = vmatpush.msra.mxu2 %v115_v13  ;;  %189 = vmatpush.msra.mxu1 %v166_v26 }
  0x19   :  { %142 = vmatpush.msra.mxu0 %v115_v13  ;;  %247 = vmatpush.msra.mxu3 %v165_v27 }
  0x1a   :  { %74 = vadd.xlane.f32.xlu0 %v73_v5  ;;  %241 = vmatpush.msra.mxu2 %v114_v15  ;;  %v82_v17 = vmul.f32 %v262_v8, %v81_v14 }
  0x1b   :  { %143 = vmatpush.msra.mxu0 %v114_v15  ;;  %190 = vmatpush.msra.mxu1 %v165_v27 }
  0x1c   :  { %242 = vmatpush.msra.mxu2 %v113_v16  ;;  %v83_v19 = vadd.f32 %v262_v8, %v82_v17  ;;  %248 = vmatpush.msra.mxu3 %v164_v47 }
  0x1d   :  { %144 = vmatpush.msra.mxu0 %v113_v16  ;;  %191 = vmatpush.msra.mxu1 %v164_v47 }
  0x1e   :  { %243 = vmatpush.msra.mxu2 %v112_v18  ;;  %v85_v20 = vsel %vm84_vm1, %v262_v8, %v83_v19  ;;  %249 = vmatpush.msra.mxu3 %v163_v48 }
  0x1f   :  { %145 = vmatpush.msra.mxu0 %v112_v18  ;;  %192 = vmatpush.msra.mxu1 %v163_v48 }
  0x20   :  { %250 = vmatpush.msra.mxu3 %v162_v49 }
  0x21   :  { %193 = vmatpush.msra.mxu1 %v162_v49 }
  0x22   :  { %251 = vmatpush.msra.mxu3 %v161_v50 }
  0x23   :  { %194 = vmatpush.msra.mxu1 %v161_v50 }
  0x85   :  { %v78_v21 = vpop.xlane.xlu0 %77 }
  0x86   :  { %v87_v22 = vmul.f32 %v85_v20, %v78_v21 }
  0x88   :  { %v89_v25 = vadd.f32 1e-08, %v87_v22 }
  0x8a   :  { %263 = vrsqrt.f32 %v89_v25  ;;  %vm106_vm3 = vweird.f32 %v89_v25 }
  0x8d   :  { %v75_v28 = vpop.xlane.xlu0 %74 }
  0x8e   :  { %v86_v29 = vmul.f32 %v85_v20, %v75_v28 }
  0x90   :  { %v264_v30 = vpop.eup %263  ;;  %v88_v31 = vadd.f32 1e-08, %v86_v29 }
  0x91   :  { %v101_v32 = vmul.f32 %v264_v30, %v89_v25  ;;  %vm107_vm2 = vweird.f32 %v264_v30 }
  0x92   :  { %265 = vrsqrt.f32 %v88_v31  ;;  %vm108_vm4 = vmor %vm106_vm3, %vm107_vm2  ;;  %vm96_vm6 = vweird.f32 %v88_v31 }
  0x93   :  { %v102_v33 = vmul.f32 %v264_v30, %v101_v32 }
  0x95   :  { %v103_v34 = vmul.f32 0.5, %v102_v33 }
  0x97   :  { %v104_v35 = vsub.f32 1.5, %v103_v34 }
  0x98   :  { %v266_v36 = vpop.eup %265 }
  0x99   :  { %v91_v37 = vmul.f32 %v266_v36, %v88_v31  ;;  %v105_v38 = vmul.f32 %v264_v30, %v104_v35  ;;  %vm97_vm5 = vweird.f32 %v266_v36 }
  0x9a   :  { %vm98_vm7 = vmor %vm96_vm6, %vm97_vm5 }
  0x9b   :  { %v92_v39 = vmul.f32 %v266_v36, %v91_v37  ;;  %v109_v40 = vsel %vm108_vm4, %v264_v30, %v105_v38 }
  0x9c   :  { %v111_v41 = vmul.f32 %v109_v40, %v424_v0 }
  0x9d   :  { %v93_v42 = vmul.f32 0.5, %v92_v39 }
  0x9e   :  { %233 = vmatmul.msk.f32.vlgmr.msra.gmra.mxu2 %vm72_vm0, %v111_v41 }
  0x9f   :  { %v94_v43 = vsub.f32 1.5, %v93_v42 }
  0xa1   :  { %v95_v44 = vmul.f32 %v266_v36, %v94_v43 }
  0xa3   :  { %v99_v45 = vsel %vm98_vm7, %v266_v36, %v95_v44 }
  0xa4   :  { %v110_v46 = vmul.f32 %v99_v45, %v428_v2 }
  0xa6   :  { %232 = vmatmul.msk.f32.vlgmr.msra.gmra.mxu0 %vm72_vm0, %v110_v46 }
 0x121   :  { %v150_v52 = vpop.f32.mrf.mxu2 }
 0x122   :  { %v151_v53 = vadd.f32 %v259_v51, %v150_v52 }
 0x123   :  { %v147_v54 = vpop.f32.mrf.mxu0 }
 0x124   :  { %vm154_vm8 = vcmp.ge.f32.partialorder %v151_v53, 0.0  ;;  %v156_v55 = vmul.f32 0.2, %v151_v53  ;;  %v148_v56 = vadd.f32 %v259_v51, %v147_v54 }
 0x126   :  { %vm153_vm9 = vcmp.ge.f32.partialorder %v148_v56, 0.0  ;;  %v155_v57 = vmul.f32 0.2, %v148_v56  ;;  %v158_v58 = vsel %vm154_vm8, %v151_v53, %v156_v55 }
 0x127   :  { %v160_v59 = vmul.f32 1.4142135, %v158_v58 }
 0x128   :  { %v157_v60 = vsel %vm153_vm9, %v148_v56, %v155_v57 }
 0x129   :  { %235 = vmatmul.msk.f32.vlgmr.msra.gmra.mxu3 %vm72_vm0, %v160_v59  ;;  %v159_v61 = vmul.f32 1.4142135, %v157_v60 }
 0x12b   :  { %234 = vmatmul.msk.f32.vlgmr.msra.gmra.mxu1 %vm72_vm0, %v159_v61 }
 0x1a8   :  { %v196_v63 = vpop.f32.mrf.mxu1 }
 0x1a9   :  { %v197_v0 = vadd.f32 %v260_v62, %v196_v63 }
 0x1ab   :  { %vm202_vm10 = vcmp.ge.f32.partialorder %v197_v0, 0.0  ;;  %v204_v1 = vmul.f32 0.2, %v197_v0 }
 0x1ac   :  { %v199_v2 = vpop.f32.mrf.mxu3 }
 0x1ad   :  { %v206_v3 = vsel %vm202_vm10, %v197_v0, %v204_v1  ;;  %v200_v4 = vadd.f32 %v260_v62, %v199_v2 }
 0x1ae   :  { %v208_v5 = vmul.f32 1.4142135, %v206_v3 }
 0x1af   :  { %vm203_vm11 = vcmp.ge.f32.partialorder %v200_v4, 0.0  ;;  %v205_v6 = vmul.f32 0.2, %v200_v4 }
 0x1b0   :  { %210 = vst.msk [vmem:[#allocation8] sm:$0xff] %vm72_vm0, %v208_v5 }
 0x1b1   :  { %v207_v7 = vsel %vm203_vm11, %v200_v4, %v205_v6 }
 0x1b2   :  { %v209_v8 = vmul.f32 1.4142135, %v207_v7 }
 0x1b4   :  { %211 = vst.msk [vmem:[#allocation8 + $0x8] sm:$0xff] %vm72_vm0, %v209_v8 }
 0x1b5   :  { %224 = dma.vmem_to_hbm [thread:$0]  %s217_s11, 256, %s219_s14, [#allocation4], %s370_s26, %s370_s26, %s371_s27  }
 0x1b6   :  { %367 = dma.done.wait [#allocation4], 256  }
 0x1b7   :  { %368 = vsyncadd [#allocation4], 4294967040 }
 0x1b8   :  { %229 = vsyncpa [#allocation3], 1 }
 0x1b9   :  { %230 = vsyncpa [#allocation6], 1 }
 0x1ba   :  { %231 = vsyncpa [#allocation4], 1 }

</bundles_post_ra>
